<compile_context>
chip_gen: v6e
topology: v6e:2x2x1
jax: 0.10.0
libtpu: 0.0.40
codegen_flags: <defaults>
</compile_context>

<pallas_src>
import jax
import jax.numpy as jnp
from jax.experimental import pallas as pl
from jax.experimental.pallas import tpu as pltpu

# Module-consistent small shapes.
B = 2              # batch
NUM_FILTER = 4     # channels of ft_h
NUM_FT = 3         # module arg -> num down/up conv pairs = NUM_FT - 1 = 2
H = W = 16         # spatial size of ft_h

C0 = NUM_FILTER        # 4
C1 = 2 * NUM_FILTER    # 8
C2 = 4 * NUM_FILTER    # 16

# ---------------------------------------------------------------------------
# Packed parameter slab layout (rows x 128 lanes, f32).  Each op's weight sits
# in cols [0:K); its bias sits in column _BIAS_COL.
# ---------------------------------------------------------------------------
_R_D0 = 4 * C1         # 32 rows : block-diag down0  (scale0-stacked -> scale1-stacked)
_R_D1 = C2             # 16 rows : down1              (scale1-stacked -> scale2)
_R_U1 = 4 * C1         # 32 rows : up1                (scale2 -> scale1-stacked)
_R_U0 = 16 * C0        # 64 rows : block-diag up0     (scale1-stacked -> scale0-stacked)
_O_D0 = 0
_O_D1 = _O_D0 + _R_D0
_O_U1 = _O_D1 + _R_D1
_O_U0 = _O_U1 + _R_U1
_SLAB_ROWS = _O_U0 + _R_U0     # 144
_SLAB_COLS = 128
_BIAS_COL = 64

_K_D0 = 16 * C0        # 64
_K_D1 = 4 * C1         # 32
_K_U1 = C2             # 16
_K_U0 = 4 * C1         # 32


# ---------------------------------------------------------------------------
# The fused Pallas kernel: 6 matmuls + adds/subs + PReLU.  No data movement.
# ---------------------------------------------------------------------------
def _decoder_mdc_kernel(x0_ref, x1_ref, x2_ref, w_ref, alpha_ref, o_ref):
    # PReLU slopes as SMEM scalars (ride the scalar slots, no vector loads).
    a_d0 = alpha_ref[0]
    a_d1 = alpha_ref[1]
    a_u0 = alpha_ref[2]
    a_u1 = alpha_ref[3]

    def conv(x, row0, rows, kdim, alpha):
        # Single matmul per conv/deconv; bias added once after quadrant merge.
        w = w_ref[row0:row0 + rows, 0:kdim]                      # (rows, K) static slice
        b = w_ref[row0:row0 + rows, _BIAS_COL:_BIAS_COL + 1]     # (rows, 1)
        y = jnp.dot(w, x, preferred_element_type=jnp.float32) + b
        return jnp.where(y > 0.0, y, alpha * y)                  # PReLU, scalar slope

    x0 = x0_ref[...]        # (16*C0, N2) = (64, 32)  ft_h,        scale-0 fully stacked
    x1 = x1_ref[...]        # ( 4*C1, N2) = (32, 32)  ft_l_list[1], scale-1 stacked
    x2 = x2_ref[...]        # (   C2, N2) = (16, 32)  ft_l_list[0], scale-2 plain

    fusion = x0

    # i = 0 : down0 -> down1 -> (- ft_l_list[0]) -> up1 -> up0
    ft = conv(fusion, _O_D0, _R_D0, _K_D0, a_d0)     # (32, 32)
    ft = conv(ft,     _O_D1, _R_D1, _K_D1, a_d1)     # (16, 32)
    ft = ft - x2
    ft = conv(ft,     _O_U1, _R_U1, _K_U1, a_u1)     # (32, 32)
    ft = conv(ft,     _O_U0, _R_U0, _K_U0, a_u0)     # (64, 32)
    fusion = fusion + ft

    # i = 1 : down0 -> (- ft_l_list[1]) -> up0
    ft = conv(fusion, _O_D0, _R_D0, _K_D0, a_d0)     # (32, 32)
    ft = ft - x1
    ft = conv(ft,     _O_U0, _R_U0, _K_U0, a_u0)     # (64, 32)
    fusion = fusion + ft

    o_ref[...] = fusion.astype(o_ref.dtype)


# ---------------------------------------------------------------------------
# Host-side layout plumbing — pure reshape/transpose, no gathers.
#
# Column index n of every slab corresponds to one coarsest-scale (scale-2)
# position: n = (h2*W2 + w2)*B + b.  Finer spatial positions are stacked along
# the sublane axis:  scale-0 row = (q1*4 + q0)*C0 + c0,  scale-1 row = q1*C1 + c1,
# with q1 = r1h*2 + r1w (scale-1 child within the scale-2 cell) and
#      q0 = r0h*2 + r0w (scale-0 child within the scale-1 cell).
# ---------------------------------------------------------------------------
def _to_stacked_scale0(x):            # (B, C0, 16, 16) -> (16*C0, N2)
    b, c, h, w = x.shape
    x = x.reshape(b, c, h // 4, 2, 2, w // 4, 2, 2)       # (b,c,h2,r1h,r0h,w2,r1w,r0w)
    x = jnp.transpose(x, (3, 6, 4, 7, 1, 2, 5, 0))        # (r1h,r1w,r0h,r0w,c,h2,w2,b)
    return x.reshape(16 * c, (h // 4) * (w // 4) * b)


def _to_stacked_scale1(x):            # (B, C1, 8, 8) -> (4*C1, N2)
    b, c, h, w = x.shape
    x = x.reshape(b, c, h // 2, 2, w // 2, 2)             # (b,c,h2,r1h,w2,r1w)
    x = jnp.transpose(x, (3, 5, 1, 2, 4, 0))              # (r1h,r1w,c,h2,w2,b)
    return x.reshape(4 * c, (h // 2) * (w // 2) * b)


def _to_scale2(x):                    # (B, C2, 4, 4) -> (C2, N2)
    b, c, h, w = x.shape
    x = jnp.transpose(x, (1, 2, 3, 0))                    # (c,h2,w2,b)
    return x.reshape(c, h * w * b)


def _from_stacked_scale0(y, b, c, hs):  # (16*c, N2) -> (B, c, hs, hs)
    y = y.reshape(2, 2, 2, 2, c, hs // 4, hs // 4, b)     # (r1h,r1w,r0h,r0w,c,h2,w2,b)
    y = jnp.transpose(y, (7, 4, 5, 0, 2, 6, 1, 3))        # (b,c,h2,r1h,r0h,w2,r1w,r0w)
    return y.reshape(b, c, hs, hs)


# ---------------------------------------------------------------------------
# One-time parameter packing (done outside the jitted forward: pay it once).
# ---------------------------------------------------------------------------
def pack_params(params):
    def conv_w_stacked(w):     # (Co, Ci, 2, 2) -> (Co, 4*Ci), K index = q*Ci + ci, q = kh*2+kw
        co, ci = w.shape[0], w.shape[1]
        return jnp.transpose(w, (0, 2, 3, 1)).reshape(co, 4 * ci)

    def deconv_w_stacked(w):   # (Ci, Co, 2, 2) -> (4*Co, Ci), row = q*Co + co, q = kh*2+kw
        ci, co = w.shape[0], w.shape[1]
        return jnp.transpose(w, (2, 3, 1, 0)).reshape(4 * co, ci)

    eye4 = jnp.eye(4, dtype=jnp.float32)
    # Two-level (block-diagonal over the scale-1 quadrant q1) versions of down0/up0.
    wd0_full = jnp.kron(eye4, conv_w_stacked(params["wd0"]).astype(jnp.float32))    # (32, 64)
    wd1_full = conv_w_stacked(params["wd1"]).astype(jnp.float32)                    # (16, 32)
    wu1_full = deconv_w_stacked(params["wu1"]).astype(jnp.float32)                  # (32, 16)
    wu0_full = jnp.kron(eye4, deconv_w_stacked(params["wu0"]).astype(jnp.float32))  # (64, 32)

    bd0_full = jnp.tile(params["bd0"], 4)        # (32,)
    bd1_full = params["bd1"]                     # (16,)
    bu1_full = jnp.tile(params["bu1"], 4)        # (32,)
    bu0_full = jnp.tile(params["bu0"], 16)       # (64,)

    slab = jnp.zeros((_SLAB_ROWS, _SLAB_COLS), jnp.float32)
    slab = slab.at[_O_D0:_O_D0 + _R_D0, 0:_K_D0].set(wd0_full)
    slab = slab.at[_O_D0:_O_D0 + _R_D0, _BIAS_COL].set(bd0_full)
    slab = slab.at[_O_D1:_O_D1 + _R_D1, 0:_K_D1].set(wd1_full)
    slab = slab.at[_O_D1:_O_D1 + _R_D1, _BIAS_COL].set(bd1_full)
    slab = slab.at[_O_U1:_O_U1 + _R_U1, 0:_K_U1].set(wu1_full)
    slab = slab.at[_O_U1:_O_U1 + _R_U1, _BIAS_COL].set(bu1_full)
    slab = slab.at[_O_U0:_O_U0 + _R_U0, 0:_K_U0].set(wu0_full)
    slab = slab.at[_O_U0:_O_U0 + _R_U0, _BIAS_COL].set(bu0_full)

    alphas = jnp.stack([params["ad0"], params["ad1"],
                        params["au0"], params["au1"]]).astype(jnp.float32)  # (4,)
    return slab, alphas


# ---------------------------------------------------------------------------
# Jitted forward: relayout + single gridless pallas_call + un-layout.
# ---------------------------------------------------------------------------
@jax.jit
def decoder_mdcblock1_pallas(ft_h, ft_l_list, wslab, alphas):
    b, c0, hs, ws = ft_h.shape
    n2 = b * (hs // 4) * (ws // 4)

    x0 = _to_stacked_scale0(ft_h)           # (64, 32)
    x2 = _to_scale2(ft_l_list[0])           # (16, 32)   scale 2
    x1 = _to_stacked_scale1(ft_l_list[1])   # (32, 32)   scale 1

    vmem = pl.BlockSpec(memory_space=pltpu.MemorySpace.VMEM)
    smem = pl.BlockSpec(memory_space=pltpu.MemorySpace.SMEM)

    out = pl.pallas_call(
        _decoder_mdc_kernel,
        out_shape=jax.ShapeDtypeStruct((16 * c0, n2), jnp.float32),
        in_specs=[vmem, vmem, vmem, vmem, smem],
        out_specs=vmem,
    )(x0, x1, x2, wslab, alphas)

    # TODO(synk): at realistic batch/spatial sizes, add a 1-D "parallel" grid over lane
    # blocks so v7x's second TensorCore is used; at this toy size gridless is fastest.
    return _from_stacked_scale0(out, b, c0, hs)


# ---------------------------------------------------------------------------
# Pure-JAX reference (mirrors the PyTorch module exactly) — regression test.
# ---------------------------------------------------------------------------
def _conv_block_ref(x, w, bias, a):
    bb, ci, hh, ww = x.shape
    xr = x.reshape(bb, ci, hh // 2, 2, ww // 2, 2)
    y = jnp.einsum("bihpwq,oipq->bohw", xr, w) + bias[None, :, None, None]
    return jnp.where(y > 0, y, a * y)


def _deconv_block_ref(x, w, bias, a):
    bb, ci, hh, ww = x.shape
    co = w.shape[1]
    y = jnp.einsum("bihw,iopq->bohpwq", x, w).reshape(bb, co, hh * 2, ww * 2)
    y = y + bias[None, :, None, None]
    return jnp.where(y > 0, y, a * y)


def decoder_mdcblock1_ref(ft_h, ft_l_list, params):
    num_ft = NUM_FT - 1
    dw = [(params["wd0"], params["bd0"], params["ad0"]),
          (params["wd1"], params["bd1"], params["ad1"])]
    uw = [(params["wu0"], params["bu0"], params["au0"]),
          (params["wu1"], params["bu1"], params["au1"])]
    ft_fusion = ft_h
    for i in range(len(ft_l_list)):
        ft = ft_fusion
        for j in range(num_ft - i):
            ft = _conv_block_ref(ft, *dw[j])
        ft = ft - ft_l_list[i]
        for j in range(num_ft - i):
            ft = _deconv_block_ref(ft, *uw[num_ft - i - j - 1])
        ft_fusion = ft_fusion + ft
    return ft_fusion


def init_params(key):
    ks = jax.random.split(key, 8)
    p = {}
    p["wd0"] = jax.random.normal(ks[0], (2 * NUM_FILTER, NUM_FILTER, 2, 2), jnp.float32) * 0.1
    p["bd0"] = jax.random.normal(ks[1], (2 * NUM_FILTER,), jnp.float32) * 0.1
    p["wd1"] = jax.random.normal(ks[2], (4 * NUM_FILTER, 2 * NUM_FILTER, 2, 2), jnp.float32) * 0.1
    p["bd1"] = jax.random.normal(ks[3], (4 * NUM_FILTER,), jnp.float32) * 0.1
    p["wu0"] = jax.random.normal(ks[4], (2 * NUM_FILTER, NUM_FILTER, 2, 2), jnp.float32) * 0.1
    p["bu0"] = jax.random.normal(ks[5], (NUM_FILTER,), jnp.float32) * 0.1
    p["wu1"] = jax.random.normal(ks[6], (4 * NUM_FILTER, 2 * NUM_FILTER, 2, 2), jnp.float32) * 0.1
    p["bu1"] = jax.random.normal(ks[7], (2 * NUM_FILTER,), jnp.float32) * 0.1
    # PReLU slopes (single shared parameter per block, PyTorch default-style).
    p["ad0"] = jnp.array(0.25, jnp.float32)
    p["ad1"] = jnp.array(0.20, jnp.float32)
    p["au0"] = jnp.array(0.30, jnp.float32)
    p["au1"] = jnp.array(0.15, jnp.float32)
    return p


if __name__ == "__main__":
    key = jax.random.PRNGKey(0)
    k_h, k_l0, k_l1, k_p = jax.random.split(key, 4)

    ft_h = jax.random.normal(k_h, (B, NUM_FILTER, H, W), jnp.float32)
    ft_l_list = [
        jax.random.normal(k_l0, (B, 4 * NUM_FILTER, H // 4, W // 4), jnp.float32),  # scale 2
        jax.random.normal(k_l1, (B, 2 * NUM_FILTER, H // 2, W // 2), jnp.float32),  # scale 1
    ]
    params = init_params(k_p)

    wslab, alphas = pack_params(params)   # one-time parameter packing (init-time cost)

    out = decoder_mdcblock1_pallas(ft_h, ft_l_list, wslab, alphas)
    out = jax.block_until_ready(out)

    ref = decoder_mdcblock1_ref(ft_h, ft_l_list, params)
    assert out.shape == (B, NUM_FILTER, H, W)
    max_err = float(jnp.max(jnp.abs(out - ref)))
    assert jnp.allclose(out, ref, atol=1e-4, rtol=1e-4), f"mismatch vs reference (max err {max_err})"

    print("KERNEL_OK")
</pallas_src>

<mosaic_0001>
module attributes {stable_mosaic.version = 11 : i64} {
  func.func @_decoder_mdc_kernel(%arg0: memref<64x32xf32, #tpu.memory_space<vmem>>, %arg1: memref<32x32xf32, #tpu.memory_space<vmem>>, %arg2: memref<16x32xf32, #tpu.memory_space<vmem>>, %arg3: memref<144x128xf32, #tpu.memory_space<vmem>>, %arg4: memref<4xf32, #tpu.memory_space<smem>>, %arg5: memref<64x32xf32, #tpu.memory_space<vmem>>) attributes {dimension_semantics = [], scalar_prefetch = 0 : i64, scratch_operands = 0 : i64, tpu.core_type = #tpu.core_type<tc>} {
    %c0 = arith.constant 0 : index
    %0 = memref.load %arg4[%c0] : memref<4xf32, #tpu.memory_space<smem>>
    %c1 = arith.constant 1 : index
    %1 = memref.load %arg4[%c1] : memref<4xf32, #tpu.memory_space<smem>>
    %c2 = arith.constant 2 : index
    %2 = memref.load %arg4[%c2] : memref<4xf32, #tpu.memory_space<smem>>
    %c3 = arith.constant 3 : index
    %3 = memref.load %arg4[%c3] : memref<4xf32, #tpu.memory_space<smem>>
    %c0_0 = arith.constant 0 : index
    %c0_1 = arith.constant 0 : index
    %4 = vector.load %arg0[%c0_0, %c0_1] : memref<64x32xf32, #tpu.memory_space<vmem>>, vector<64x32xf32>
    %c0_2 = arith.constant 0 : index
    %c0_3 = arith.constant 0 : index
    %5 = vector.load %arg1[%c0_2, %c0_3] : memref<32x32xf32, #tpu.memory_space<vmem>>, vector<32x32xf32>
    %c0_4 = arith.constant 0 : index
    %c0_5 = arith.constant 0 : index
    %6 = vector.load %arg2[%c0_4, %c0_5] : memref<16x32xf32, #tpu.memory_space<vmem>>, vector<16x32xf32>
    %c0_6 = arith.constant 0 : index
    %c0_7 = arith.constant 0 : index
    %7 = vector.load %arg3[%c0_6, %c0_7] : memref<144x128xf32, #tpu.memory_space<vmem>>, vector<32x64xf32>
    %c0_8 = arith.constant 0 : index
    %c64 = arith.constant 64 : index
    %8 = vector.load %arg3[%c0_8, %c64] : memref<144x128xf32, #tpu.memory_space<vmem>>, vector<32x1xf32>
    %cst = arith.constant dense<0.000000e+00> : vector<32x32xf32>
    %9 = tpu.matmul %7, %4, %cst {dimension_numbers = #tpu.dot_dimension_numbers<[1], [0], [0], [1], [0, 0, 1, 1], [], []>} : vector<32x64xf32>, vector<64x32xf32>, vector<32x32xf32> -> vector<32x32xf32>
    %10 = vector.broadcast %8 : vector<32x1xf32> to vector<32x32xf32>
    %11 = arith.addf %9, %10 : vector<32x32xf32>
    %cst_9 = arith.constant 0.000000e+00 : f32
    %12 = vector.broadcast %cst_9 : f32 to vector<32x32xf32>
    %13 = arith.cmpf ogt, %11, %12 : vector<32x32xf32>
    %14 = vector.broadcast %0 : f32 to vector<32x32xf32>
    %15 = arith.mulf %14, %11 : vector<32x32xf32>
    %16 = arith.select %13, %11, %15 : vector<32x32xi1>, vector<32x32xf32>
    %c32 = arith.constant 32 : index
    %c0_10 = arith.constant 0 : index
    %17 = vector.load %arg3[%c32, %c0_10] : memref<144x128xf32, #tpu.memory_space<vmem>>, vector<16x32xf32>
    %c32_11 = arith.constant 32 : index
    %c64_12 = arith.constant 64 : index
    %18 = vector.load %arg3[%c32_11, %c64_12] : memref<144x128xf32, #tpu.memory_space<vmem>>, vector<16x1xf32>
    %cst_13 = arith.constant dense<0.000000e+00> : vector<16x32xf32>
    %19 = tpu.matmul %17, %16, %cst_13 {dimension_numbers = #tpu.dot_dimension_numbers<[1], [0], [0], [1], [0, 0, 1, 1], [], []>} : vector<16x32xf32>, vector<32x32xf32>, vector<16x32xf32> -> vector<16x32xf32>
    %20 = vector.broadcast %18 : vector<16x1xf32> to vector<16x32xf32>
    %21 = arith.addf %19, %20 : vector<16x32xf32>
    %cst_14 = arith.constant 0.000000e+00 : f32
    %22 = vector.broadcast %cst_14 : f32 to vector<16x32xf32>
    %23 = arith.cmpf ogt, %21, %22 : vector<16x32xf32>
    %24 = vector.broadcast %1 : f32 to vector<16x32xf32>
    %25 = arith.mulf %24, %21 : vector<16x32xf32>
    %26 = arith.select %23, %21, %25 : vector<16x32xi1>, vector<16x32xf32>
    %27 = arith.subf %26, %6 : vector<16x32xf32>
    %c48 = arith.constant 48 : index
    %c0_15 = arith.constant 0 : index
    %28 = vector.load %arg3[%c48, %c0_15] : memref<144x128xf32, #tpu.memory_space<vmem>>, vector<32x16xf32>
    %c48_16 = arith.constant 48 : index
    %c64_17 = arith.constant 64 : index
    %29 = vector.load %arg3[%c48_16, %c64_17] : memref<144x128xf32, #tpu.memory_space<vmem>>, vector<32x1xf32>
    %cst_18 = arith.constant dense<0.000000e+00> : vector<32x32xf32>
    %30 = tpu.matmul %28, %27, %cst_18 {dimension_numbers = #tpu.dot_dimension_numbers<[1], [0], [0], [1], [0, 0, 1, 1], [], []>} : vector<32x16xf32>, vector<16x32xf32>, vector<32x32xf32> -> vector<32x32xf32>
    %31 = vector.broadcast %29 : vector<32x1xf32> to vector<32x32xf32>
    %32 = arith.addf %30, %31 : vector<32x32xf32>
    %cst_19 = arith.constant 0.000000e+00 : f32
    %33 = vector.broadcast %cst_19 : f32 to vector<32x32xf32>
    %34 = arith.cmpf ogt, %32, %33 : vector<32x32xf32>
    %35 = vector.broadcast %3 : f32 to vector<32x32xf32>
    %36 = arith.mulf %35, %32 : vector<32x32xf32>
    %37 = arith.select %34, %32, %36 : vector<32x32xi1>, vector<32x32xf32>
    %c80 = arith.constant 80 : index
    %c0_20 = arith.constant 0 : index
    %38 = vector.load %arg3[%c80, %c0_20] : memref<144x128xf32, #tpu.memory_space<vmem>>, vector<64x32xf32>
    %c80_21 = arith.constant 80 : index
    %c64_22 = arith.constant 64 : index
    %39 = vector.load %arg3[%c80_21, %c64_22] : memref<144x128xf32, #tpu.memory_space<vmem>>, vector<64x1xf32>
    %cst_23 = arith.constant dense<0.000000e+00> : vector<64x32xf32>
    %40 = tpu.matmul %38, %37, %cst_23 {dimension_numbers = #tpu.dot_dimension_numbers<[1], [0], [0], [1], [0, 0, 1, 1], [], []>} : vector<64x32xf32>, vector<32x32xf32>, vector<64x32xf32> -> vector<64x32xf32>
    %41 = vector.broadcast %39 : vector<64x1xf32> to vector<64x32xf32>
    %42 = arith.addf %40, %41 : vector<64x32xf32>
    %cst_24 = arith.constant 0.000000e+00 : f32
    %43 = vector.broadcast %cst_24 : f32 to vector<64x32xf32>
    %44 = arith.cmpf ogt, %42, %43 : vector<64x32xf32>
    %45 = vector.broadcast %2 : f32 to vector<64x32xf32>
    %46 = arith.mulf %45, %42 : vector<64x32xf32>
    %47 = arith.select %44, %42, %46 : vector<64x32xi1>, vector<64x32xf32>
    %48 = arith.addf %4, %47 : vector<64x32xf32>
    %c0_25 = arith.constant 0 : index
    %c0_26 = arith.constant 0 : index
    %49 = vector.load %arg3[%c0_25, %c0_26] : memref<144x128xf32, #tpu.memory_space<vmem>>, vector<32x64xf32>
    %c0_27 = arith.constant 0 : index
    %c64_28 = arith.constant 64 : index
    %50 = vector.load %arg3[%c0_27, %c64_28] : memref<144x128xf32, #tpu.memory_space<vmem>>, vector<32x1xf32>
    %cst_29 = arith.constant dense<0.000000e+00> : vector<32x32xf32>
    %51 = tpu.matmul %49, %48, %cst_29 {dimension_numbers = #tpu.dot_dimension_numbers<[1], [0], [0], [1], [0, 0, 1, 1], [], []>} : vector<32x64xf32>, vector<64x32xf32>, vector<32x32xf32> -> vector<32x32xf32>
    %52 = vector.broadcast %50 : vector<32x1xf32> to vector<32x32xf32>
    %53 = arith.addf %51, %52 : vector<32x32xf32>
    %cst_30 = arith.constant 0.000000e+00 : f32
    %54 = vector.broadcast %cst_30 : f32 to vector<32x32xf32>
    %55 = arith.cmpf ogt, %53, %54 : vector<32x32xf32>
    %56 = vector.broadcast %0 : f32 to vector<32x32xf32>
    %57 = arith.mulf %56, %53 : vector<32x32xf32>
    %58 = arith.select %55, %53, %57 : vector<32x32xi1>, vector<32x32xf32>
    %59 = arith.subf %58, %5 : vector<32x32xf32>
    %c80_31 = arith.constant 80 : index
    %c0_32 = arith.constant 0 : index
    %60 = vector.load %arg3[%c80_31, %c0_32] : memref<144x128xf32, #tpu.memory_space<vmem>>, vector<64x32xf32>
    %c80_33 = arith.constant 80 : index
    %c64_34 = arith.constant 64 : index
    %61 = vector.load %arg3[%c80_33, %c64_34] : memref<144x128xf32, #tpu.memory_space<vmem>>, vector<64x1xf32>
    %cst_35 = arith.constant dense<0.000000e+00> : vector<64x32xf32>
    %62 = tpu.matmul %60, %59, %cst_35 {dimension_numbers = #tpu.dot_dimension_numbers<[1], [0], [0], [1], [0, 0, 1, 1], [], []>} : vector<64x32xf32>, vector<32x32xf32>, vector<64x32xf32> -> vector<64x32xf32>
    %63 = vector.broadcast %61 : vector<64x1xf32> to vector<64x32xf32>
    %64 = arith.addf %62, %63 : vector<64x32xf32>
    %cst_36 = arith.constant 0.000000e+00 : f32
    %65 = vector.broadcast %cst_36 : f32 to vector<64x32xf32>
    %66 = arith.cmpf ogt, %64, %65 : vector<64x32xf32>
    %67 = vector.broadcast %2 : f32 to vector<64x32xf32>
    %68 = arith.mulf %67, %64 : vector<64x32xf32>
    %69 = arith.select %66, %64, %68 : vector<64x32xi1>, vector<64x32xf32>
    %70 = arith.addf %48, %69 : vector<64x32xf32>
    %c0_37 = arith.constant 0 : index
    %c0_38 = arith.constant 0 : index
    %71 = vector.load %arg5[%c0_37, %c0_38] : memref<64x32xf32, #tpu.memory_space<vmem>>, vector<64x32xf32>
    tpu.vector_store %arg5[%c0_37, %c0_38], %70 {strides = array<i32>} : memref<64x32xf32, #tpu.memory_space<vmem>>, vector<64x32xf32>,
    return
  }
}

</mosaic_0001>

<bundles_post_ra>
// kernel: decoder_mdcblock1_pallas.1
= control target key start
LH: loop header
LB: loop body
LE: loop exit
PB: predicated region body
PF: predicated region fallthrough
CT: control target
= control target key end

     0   :  { %10 = vsyncpa [#allocation3], 0  ;;  %s1508_s0 = inlined_call_operand.vmem [shape: f32[64,32], index: 0, kind: input, shape index: {}]   ;;  %s1509_s1 = inlined_call_operand.vmem [shape: f32[32,32], index: 1, kind: input, shape index: {}]   ;;  %s1510_s2 = inlined_call_operand.vmem [shape: f32[16,32], index: 2, kind: input, shape index: {}]   ;;  %s1511_s3 = inlined_call_operand.vmem [shape: f32[144,128], index: 3, kind: input, shape index: {}]   ;;  %s1512_s4 = inlined_call_operand.vmem [shape: f32[4], index: 4, kind: input, shape index: {}]   ;;  %s1513_s5 = inlined_call_operand.vmem [shape: f32[64,32], index: 5, kind: output, shape index: {}]  }
   0x1   :  { %s25_s20 = sshll.u32 %s1512_s4, 4  ;;  %s26_s20 = int_to_ptr.vmem [resolvable:$true] %s25_s20 }
   0x2   :  { %s1069_s21 = scalar_lea.vmem %s26_s20, 16  ;;  %p1074_p1 = scmp.lt.s32.totalorder %s26_s20, %s26_s20 }
   0x3   :  { %p1070_p0 = scmp.ne.s32.totalorder %s26_s20, %s1069_s21  ;;  %p1075_p2 = scmp.lt.s32.totalorder %s1069_s21, %s1069_s21 }
   0x5   :  { %p1076_p3 = por %p1075_p2, %p1074_p1 }
   0x7   :  { %p1077_p4 = pnand %p1076_p3, %p1070_p0 }
   0x9   :  { %1080 = shalt.err (!%p1077_p4)
}
   0xa   :  { %s1083_s22 = smov [#allocation2]  }
   0xb   :  { %28 = dma.vmem_to_smem %s26_s20, 16, %s1083_s22, [#allocation3]  }
   0xc   :  { %1081 = dma.done.wait [#allocation3], 16  }
   0xd   :  { %1082 = vsyncadd [#allocation3], 4294967280 }
   0xe   :  { %32 = sfence }
   0xf   :  { %v1121_v0 = vld [vmem:[%s1508_s0 + $0x38] sm:$0xff]  ;;  %v1126_v1 = vld [vmem:[%s1508_s0 + $0x30] sm:$0xff]  ;;  %vm75_vm0 = vcmask 523264   ;;  %v1084_v2 = vmov 64   ;;  %v1133_v3 = vld [vmem:[%s1508_s0 + $0x28] sm:$0xff]  ;;  %vm194_vm1 = vcmask 261120  }
  0x10   :  { %960 = vmatprep.subr.mxu0 %v1121_v0  ;;  %1067 = vset.pattern.permute.xlu0 %v1084_v2  ;;  %v1138_v4 = vld [vmem:[%s1511_s3] sm:$0xff]  ;;  %v1146_v5 = vld [vmem:[%s1511_s3 + $0x18] sm:$0xff]  ;;  %v1157_v7 = vld [vmem:[%s1511_s3 + $0x8] sm:$0xff]  ;;  %s33_s22 = sld [smem:[#allocation2]]  ;;  %vm307_vm6 = vcmask 130048  }
  0x11   :  { %961 = vmatpush3.msra.mxu0 %v1121_v0  ;;  %1068 = vset.pattern.permute.xlu1 %v1084_v2  ;;  %v1152_v6 = vld [vmem:[%s1508_s0 + $0x20] sm:$0xff]  ;;  %v1166_v8 = vld [vmem:[%s1508_s0 + $0x18] sm:$0xff]  ;;  %v1172_v9 = vld [vmem:[%s1511_s3 + $0x10] sm:$0xff]  ;;  %s868_s26 = sld [smem:[#allocation2 + $0x2]] }
  0x12   :  { %962 = vmatprep.subr.mxu0 %v1126_v1  ;;  %976 = vmatprep.mubr.msk.f32.mxu0 %vm75_vm0, %v1138_v4  ;;  %v1178_v10 = vld [vmem:[%s1508_s0 + $0x10] sm:$0xff]  ;;  %v1185_v11 = vld [vmem:[%s1511_s3 + $0x28] sm:$0xff]  ;;  %v182_v13 = vld [vmem:[%s1511_s3 + $0x20] sm:$0xff] }
  0x13   :  { %963 = vmatpush3.msra.mxu0 %v1126_v1  ;;  %72 = vperm.xlu0 %1067, %v1146_v5   ;;  %v1192_v12 = vld [vmem:[%s1508_s0 + $0x8] sm:$0xff]  ;;  %v1202_v14 = vld [vmem:[%s1508_s0] sm:$0xff]  ;;  %v1225_v17 = vld [vmem:[%s1511_s3 + $0x38] sm:$0xff] }
  0x14   :  { %964 = vmatprep.subr.mxu0 %v1133_v3  ;;  %62 = vperm.xlu1 %1068, %v1157_v7   ;;  %v1209_v15 = vld [vmem:[%s1511_s3 + $0x48] sm:$0xff]  ;;  %v1215_v16 = vld [vmem:[%s1511_s3 + $0x40] sm:$0xff]  ;;  %v283_v18 = vld [vmem:[%s1511_s3 + $0x30] sm:$0xff] }
  0x15   :  { %965 = vmatpush3.msra.mxu0 %v1133_v3  ;;  %v1239_v19 = vld [vmem:[%s1511_s3 + $0x88] sm:$0xff]  ;;  %v1244_v20 = vld [vmem:[%s1511_s3 + $0x80] sm:$0xff]  ;;  %v1250_v21 = vld [vmem:[%s1511_s3 + $0x78] sm:$0xff]  ;;  %997 = vmatprep.mubr.msk.f32.mxu1 %vm307_vm6, %v283_v18 }
  0x16   :  { %966 = vmatprep.subr.mxu0 %v1152_v6  ;;  %v1256_v22 = vld [vmem:[%s1511_s3 + $0x70] sm:$0xff]  ;;  %v1262_v23 = vld [vmem:[%s1511_s3 + $0x68] sm:$0xff]  ;;  %v1268_v24 = vld [vmem:[%s1511_s3 + $0x60] sm:$0xff]  ;;  %v1295_v36 = vstv %s33_s22 }
  0x17   :  { %967 = vmatpush3.msra.mxu0 %v1152_v6  ;;  %67 = vperm.xlu0 %1067, %v1172_v9   ;;  %v1274_v25 = vld [vmem:[%s1511_s3 + $0x58] sm:$0xff]  ;;  %v1280_v26 = vld [vmem:[%s1511_s3 + $0x50] sm:$0xff]  ;;  %s867_s3 = sld [smem:[#allocation2 + $0x1]]  ;;  %v50_v56 = vld [vmem:[%s1510_s2 + $0x8] sm:$0xff] }
  0x18   :  { %968 = vmatprep.subr.mxu0 %v1166_v8  ;;  %57 = vperm.xlu1 %1068, %v1138_v4   ;;  %v49_v59 = vld [vmem:[%s1510_s2] sm:$0xff]  ;;  %s869_s2 = sld [smem:[#allocation2 + $0x3]] }
  0x19   :  { %969 = vmatpush3.msra.mxu0 %v1166_v8 }
  0x1a   :  { %970 = vmatprep.subr.mxu0 %v1178_v10 }
  0x1b   :  { %971 = vmatpush3.msra.mxu0 %v1178_v10  ;;  %191 = vperm.xlu0 %1067, %v1185_v11  }
  0x1c   :  { %972 = vmatprep.subr.mxu0 %v1192_v12  ;;  %186 = vperm.xlu1 %1068, %v182_v13  }
  0x1d   :  { %973 = vmatpush3.msra.mxu0 %v1192_v12  ;;  %v276_v50 = vstv %s867_s3 }
  0x1e   :  { %974 = vmatprep.subr.mxu0 %v1202_v14 }
  0x1f   :  { %975 = vmatpush3.msra.mxu0 %v1202_v14  ;;  %304 = vperm.xlu0 %1067, %v1209_v15  }
  0x20   :  { %977 = vmatmul.mubr.msk.f32.vlgmr.msra.gmra.mxu0 %vm75_vm0, %v1157_v7  ;;  %299 = vperm.xlu1 %1068, %v1215_v16  }
  0x21   :  { %979 = vmatprep.mubr.msk.f32.mxu0 %vm75_vm0, %v1172_v9 }
  0x23   :  { %294 = vperm.xlu0 %1067, %v1225_v17  }
  0x24   :  { %980 = vmatmul.mubr.msk.f32.gmra.mxu0 %vm75_vm0, %v1146_v5  ;;  %289 = vperm.xlu1 %1068, %v283_v18  }
  0x25   :  { %990 = vmatprep.mubr.msk.f32.mxu0 %vm194_vm1, %v182_v13 }
  0x27   :  { %459 = vperm.xlu0 %1067, %v1239_v19  }
  0x28   :  { %454 = vperm.xlu1 %1068, %v1244_v20  }
  0x2b   :  { %449 = vperm.xlu0 %1067, %v1250_v21  }
  0x2c   :  { %444 = vperm.xlu1 %1068, %v1256_v22  }
  0x2f   :  { %439 = vperm.xlu0 %1067, %v1262_v23  }
  0x30   :  { %434 = vperm.xlu1 %1068, %v1268_v24  }
  0x33   :  { %429 = vperm.xlu0 %1067, %v1274_v25  }
  0x34   :  { %424 = vperm.xlu1 %1068, %v1280_v26  }
  0x8e   :  { %v1285_v27 = vpop.permute.xlu0 %72 }
  0x8f   :  { %v1287_v28 = vpop.permute.xlu1 %62 }
  0x92   :  { %v1289_v32 = vpop.permute.xlu0 %67 }
  0x93   :  { %v1293_v35 = vpop.permute.xlu1 %57 }
  0x96   :  { %v192_v48 = vpop.permute.xlu0 %191 }
  0x97   :  { %v187_v52 = vpop.permute.xlu1 %186 }
  0x9a   :  { %v305_v63 = vpop.permute.xlu0 %304 }
  0x9b   :  { %v300_v2 = vpop.permute.xlu1 %299 }
  0x9e   :  { %v295_v13 = vpop.permute.xlu0 %294 }
  0xe0   :  { %v978_v29 = vpop.f32.mrf.mxu0 }
  0xe1   :  { %v156_v33 = vadd.f32 %v978_v29, %v1287_v28 }
  0xe2   :  { %v150_v30 = vpop.f32.mrf.mxu0 }
  0xe3   :  { %v151_v38 = vadd.f32 %v150_v30, %v1293_v35  ;;  %v175_v41 = vmul.f32 %v1295_v36, %v156_v33  ;;  %vm170_vm4 = vcmp.gt.f32.partialorder %v156_v33, 0.0 }
  0xe4   :  { %v981_v31 = vpop.f32.mrf.mxu0 }
  0xe5   :  { %v166_v34 = vadd.f32 %v981_v31, %v1285_v27  ;;  %v174_v44 = vmul.f32 %v1295_v36, %v151_v38  ;;  %vm169_vm5 = vcmp.gt.f32.partialorder %v151_v38, 0.0  ;;  %v179_v46 = vsel %vm170_vm4, %v156_v33, %v175_v41  ;;  %v290_v31 = vpop.permute.xlu1 %289 }
  0xe6   :  { %v160_v37 = vpop.f32.mrf.mxu0 }
  0xe7   :  { %v177_v39 = vmul.f32 %v1295_v36, %v166_v34  ;;  %v161_v40 = vadd.f32 %v160_v37, %v1289_v32  ;;  %vm172_vm2 = vcmp.gt.f32.partialorder %v166_v34, 0.0  ;;  %v178_v47 = vsel %vm169_vm5, %v151_v38, %v174_v44  ;;  %v1338_v44 = vpop.permute.xlu0 %459 }
  0xe9   :  { %v176_v42 = vmul.f32 %v1295_v36, %v161_v40  ;;  %v181_v43 = vsel %vm172_vm2, %v166_v34, %v177_v39  ;;  %vm171_vm3 = vcmp.gt.f32.partialorder %v161_v40, 0.0 }
  0xea   :  { %982 = vmatprep.subr.mxu0 %v181_v43 }
  0xeb   :  { %983 = vmatpush3.msra.mxu0 %v181_v43  ;;  %v180_v45 = vsel %vm171_vm3, %v161_v40, %v176_v42 }
  0xec   :  { %984 = vmatprep.subr.mxu0 %v180_v45 }
  0xed   :  { %985 = vmatpush3.msra.mxu0 %v180_v45 }
  0xee   :  { %986 = vmatprep.subr.mxu0 %v179_v46 }
  0xef   :  { %987 = vmatpush3.msra.mxu0 %v179_v46  ;;  %v1340_v46 = vpop.permute.xlu1 %454 }
  0xf0   :  { %988 = vmatprep.subr.mxu0 %v178_v47 }
  0xf1   :  { %989 = vmatpush3.msra.mxu0 %v178_v47 }
  0xf2   :  { %991 = vmatmul.mubr.msk.f32.vlgmr.msra.gmra.mxu0 %vm194_vm1, %v1185_v11 }
  0xf3   :  { %1039 = vmatprep.mubr.msk.f32.mxu0 %vm75_vm0, %v1138_v4 }
 0x1b2   :  { %v992_v49 = vpop.f32.mrf.mxu0 }
 0x1b3   :  { %v271_v51 = vadd.f32 %v992_v49, %v192_v48  ;;  %v1342_v49 = vpop.permute.xlu0 %449 }
 0x1b4   :  { %v265_v53 = vpop.f32.mrf.mxu0 }
 0x1b5   :  { %v278_v54 = vmul.f32 %v276_v50, %v271_v51  ;;  %v266_v55 = vadd.f32 %v265_v53, %v187_v52  ;;  %vm275_vm7 = vcmp.gt.f32.partialorder %v271_v51, 0.0 }
 0x1b7   :  { %vm274_vm8 = vcmp.gt.f32.partialorder %v266_v55, 0.0  ;;  %v277_v57 = vmul.f32 %v276_v50, %v266_v55  ;;  %v280_v58 = vsel %vm275_vm7, %v271_v51, %v278_v54  ;;  %v1344_v51 = vpop.permute.xlu1 %444 }
 0x1b8   :  { %v282_v60 = vsub.f32 %v280_v58, %v50_v56 }
 0x1b9   :  { %v279_v61 = vsel %vm274_vm8, %v266_v55, %v277_v57  ;;  %v1347_v55 = vpop.permute.xlu0 %439 }
 0x1ba   :  { %993 = vmatprep.subr.mxu1 %v282_v60  ;;  %v281_v62 = vsub.f32 %v279_v61, %v49_v59  ;;  %v1353_v59 = vstv %s868_s26 }
 0x1bb   :  { %994 = vmatpush3.msra.mxu1 %v282_v60  ;;  %v1351_v58 = vpop.permute.xlu1 %434 }
 0x1bc   :  { %995 = vmatprep.subr.mxu1 %v281_v62 }
 0x1bd   :  { %996 = vmatpush3.msra.mxu1 %v281_v62 }
 0x1be   :  { %998 = vmatmul.mubr.msk.f32.vlgmr.msra.gmra.mxu1 %vm307_vm6, %v1225_v17  ;;  %v405_v17 = vstv %s869_s2 }
 0x1bf   :  { %1000 = vmatprep.mubr.msk.f32.mxu1 %vm307_vm6, %v1215_v16 }
 0x1c2   :  { %1001 = vmatmul.mubr.msk.f32.gmra.mxu1 %vm307_vm6, %v1209_v15 }
 0x1c3   :  { %1011 = vmatprep.mubr.msk.f32.mxu1 %vm194_vm1, %v1280_v26 }
 0x27e   :  { %v999_v4 = vpop.f32.mrf.mxu1 }
 0x27f   :  { %v388_v29 = vadd.f32 %v999_v4, %v295_v13 }
 0x280   :  { %v382_v11 = vpop.f32.mrf.mxu1 }
 0x281   :  { %v383_v34 = vadd.f32 %v382_v11, %v290_v31  ;;  %v407_v15 = vmul.f32 %v405_v17, %v388_v29  ;;  %vm402_vm11 = vcmp.gt.f32.partialorder %v388_v29, 0.0 }
 0x282   :  { %v1002_v18 = vpop.f32.mrf.mxu1 }
 0x283   :  { %v398_v30 = vadd.f32 %v1002_v18, %v305_v63  ;;  %v406_v40 = vmul.f32 %v405_v17, %v383_v34  ;;  %vm401_vm12 = vcmp.gt.f32.partialorder %v383_v34, 0.0  ;;  %v411_v42 = vsel %vm402_vm11, %v388_v29, %v407_v15  ;;  %v1362_v29 = vpop.permute.xlu0 %429 }
 0x284   :  { %v392_v33 = vpop.f32.mrf.mxu1 }
 0x285   :  { %v409_v16 = vmul.f32 %v405_v17, %v398_v30  ;;  %v393_v37 = vadd.f32 %v392_v33, %v300_v2  ;;  %vm404_vm9 = vcmp.gt.f32.partialorder %v398_v30, 0.0  ;;  %v410_v43 = vsel %vm401_vm12, %v383_v34, %v406_v40 }
 0x287   :  { %v408_v38 = vmul.f32 %v405_v17, %v393_v37  ;;  %v413_v39 = vsel %vm404_vm9, %v398_v30, %v409_v16  ;;  %vm403_vm10 = vcmp.gt.f32.partialorder %v393_v37, 0.0  ;;  %v1369_v16 = vpop.permute.xlu1 %424 }
 0x288   :  { %1003 = vmatprep.subr.mxu1 %v413_v39 }
 0x289   :  { %1004 = vmatpush3.msra.mxu1 %v413_v39  ;;  %v412_v41 = vsel %vm403_vm10, %v393_v37, %v408_v38 }
 0x28a   :  { %1005 = vmatprep.subr.mxu1 %v412_v41 }
 0x28b   :  { %1006 = vmatpush3.msra.mxu1 %v412_v41 }
 0x28c   :  { %1007 = vmatprep.subr.mxu1 %v411_v42 }
 0x28d   :  { %1008 = vmatpush3.msra.mxu1 %v411_v42 }
 0x28e   :  { %1009 = vmatprep.subr.mxu1 %v410_v43 }
 0x28f   :  { %1010 = vmatpush3.msra.mxu1 %v410_v43 }
 0x290   :  { %1012 = vmatmul.mubr.msk.f32.vlgmr.msra.gmra.mxu1 %vm194_vm1, %v1274_v25 }
 0x291   :  { %1014 = vmatprep.mubr.msk.f32.mxu1 %vm194_vm1, %v1268_v24 }
 0x294   :  { %1015 = vmatmul.mubr.msk.f32.gmra.mxu1 %vm194_vm1, %v1262_v23 }
 0x295   :  { %1017 = vmatprep.mubr.msk.f32.mxu1 %vm194_vm1, %v1256_v22 }
 0x298   :  { %1018 = vmatmul.mubr.msk.f32.gmra.mxu1 %vm194_vm1, %v1250_v21 }
 0x299   :  { %1020 = vmatprep.mubr.msk.f32.mxu1 %vm194_vm1, %v1244_v20 }
 0x29c   :  { %1021 = vmatmul.mubr.msk.f32.gmra.mxu1 %vm194_vm1, %v1239_v19 }
 0x29d   :  { %1053 = vmatprep.mubr.msk.f32.mxu1 %vm194_vm1, %v1280_v26 }
 0x350   :  { %v1013_v45 = vpop.f32.mrf.mxu1 }
 0x351   :  { %v550_v31 = vadd.f32 %v1013_v45, %v1362_v29 }
 0x352   :  { %v544_v47 = vpop.f32.mrf.mxu1 }
 0x353   :  { %v545_v15 = vadd.f32 %v544_v47, %v1369_v16  ;;  %v593_v40 = vmul.f32 %v1353_v59, %v550_v31  ;;  %vm584_vm5 = vcmp.gt.f32.partialorder %v550_v31, 0.0 }
 0x354   :  { %v1016_v48 = vpop.f32.mrf.mxu1 }
 0x355   :  { %v560_v60 = vadd.f32 %v1016_v48, %v1347_v55  ;;  %v592_v42 = vmul.f32 %v1353_v59, %v545_v15  ;;  %vm583_vm6 = vcmp.gt.f32.partialorder %v545_v15, 0.0  ;;  %v601_v45 = vsel %vm584_vm5, %v550_v31, %v593_v40 }
 0x356   :  { %v554_v50 = vpop.f32.mrf.mxu1  ;;  %v1402_v48 = vadd.f32 %v601_v45, %v1192_v12 }
 0x357   :  { %v555_v4 = vadd.f32 %v554_v50, %v1351_v58  ;;  %v595_v17 = vmul.f32 %v1353_v59, %v560_v60  ;;  %vm586_vm3 = vcmp.gt.f32.partialorder %v560_v60, 0.0 }
 0x358   :  { %v1019_v52 = vpop.f32.mrf.mxu1 }
 0x359   :  { %v570_v54 = vadd.f32 %v1019_v52, %v1342_v49  ;;  %v594_v38 = vmul.f32 %v1353_v59, %v555_v4  ;;  %vm585_vm4 = vcmp.gt.f32.partialorder %v555_v4, 0.0  ;;  %v603_v41 = vsel %vm586_vm3, %v560_v60, %v595_v17 }
 0x35a   :  { %v564_v53 = vpop.f32.mrf.mxu1 }
 0x35b   :  { %v565_v56 = vadd.f32 %v564_v53, %v1344_v51  ;;  %v597_v62 = vmul.f32 %v1353_v59, %v570_v54  ;;  %vm588_vm14 = vcmp.gt.f32.partialorder %v570_v54, 0.0  ;;  %v602_v43 = vsel %vm585_vm4, %v555_v4, %v594_v38 }
 0x35c   :  { %v1022_v26 = vpop.f32.mrf.mxu1  ;;  %v1397_v47 = vadd.f32 %v602_v43, %v1178_v10 }
 0x35d   :  { %v580_v57 = vadd.f32 %v1022_v26, %v1338_v44  ;;  %v596_v11 = vmul.f32 %v1353_v59, %v565_v56  ;;  %vm587_vm2 = vcmp.gt.f32.partialorder %v565_v56, 0.0  ;;  %v605_v34 = vsel %vm588_vm14, %v570_v54, %v597_v62 }
 0x35e   :  { %v574_v61 = vpop.f32.mrf.mxu1  ;;  %v1380_v39 = vadd.f32 %v605_v34, %v1133_v3  ;;  %v1392_v3 = vadd.f32 %v603_v41, %v1166_v8 }
 0x35f   :  { %vm590_vm13 = vcmp.gt.f32.partialorder %v580_v57, 0.0  ;;  %v599_v63 = vmul.f32 %v1353_v59, %v580_v57  ;;  %v575_v2 = vadd.f32 %v574_v61, %v1340_v46 }
 0x361   :  { %vm589_vm15 = vcmp.gt.f32.partialorder %v575_v2, 0.0  ;;  %v598_v13 = vmul.f32 %v1353_v59, %v575_v2  ;;  %v607_v18 = vsel %vm590_vm13, %v580_v57, %v599_v63 }
 0x362   :  { %v1365_v30 = vadd.f32 %v607_v18, %v1121_v0  ;;  %v604_v0 = vsel %vm587_vm2, %v565_v56, %v596_v11 }
 0x363   :  { %v606_v33 = vsel %vm589_vm15, %v575_v2, %v598_v13 }
 0x364   :  { %1023 = vmatprep.subr.mxu0 %v1365_v30  ;;  %v1373_v37 = vadd.f32 %v606_v33, %v1126_v1  ;;  %v1386_v1 = vadd.f32 %v604_v0, %v1152_v6  ;;  %v600_v6 = vsel %vm583_vm6, %v545_v15, %v592_v42 }
 0x365   :  { %1024 = vmatpush3.msra.mxu0 %v1365_v30  ;;  %v1407_v8 = vadd.f32 %v600_v6, %v1202_v14 }
 0x366   :  { %1025 = vmatprep.subr.mxu0 %v1373_v37 }
 0x367   :  { %1026 = vmatpush3.msra.mxu0 %v1373_v37 }
 0x368   :  { %1027 = vmatprep.subr.mxu0 %v1380_v39 }
 0x369   :  { %1028 = vmatpush3.msra.mxu0 %v1380_v39 }
 0x36a   :  { %1029 = vmatprep.subr.mxu0 %v1386_v1 }
 0x36b   :  { %1030 = vmatpush3.msra.mxu0 %v1386_v1 }
 0x36c   :  { %1031 = vmatprep.subr.mxu0 %v1392_v3 }
 0x36d   :  { %1032 = vmatpush3.msra.mxu0 %v1392_v3 }
 0x36e   :  { %1033 = vmatprep.subr.mxu0 %v1397_v47 }
 0x36f   :  { %1034 = vmatpush3.msra.mxu0 %v1397_v47 }
 0x370   :  { %1035 = vmatprep.subr.mxu0 %v1402_v48 }
 0x371   :  { %1036 = vmatpush3.msra.mxu0 %v1402_v48 }
 0x372   :  { %1037 = vmatprep.subr.mxu0 %v1407_v8 }
 0x373   :  { %1038 = vmatpush3.msra.mxu0 %v1407_v8 }
 0x374   :  { %1040 = vmatmul.mubr.msk.f32.vlgmr.msra.gmra.mxu0 %vm75_vm0, %v1157_v7 }
 0x375   :  { %1042 = vmatprep.mubr.msk.f32.mxu0 %vm75_vm0, %v1172_v9 }
 0x378   :  { %1043 = vmatmul.mubr.msk.f32.gmra.mxu0 %vm75_vm0, %v1146_v5  ;;  %v48_v5 = vld [vmem:[%s1509_s1 + $0x18] sm:$0xff] }
 0x434   :  { %v1041_v10 = vpop.f32.mrf.mxu0 }
 0x435   :  { %v688_v14 = vadd.f32 %v1041_v10, %v1287_v28 }
 0x436   :  { %v682_v12 = vpop.f32.mrf.mxu0 }
 0x437   :  { %v683_v52 = vadd.f32 %v682_v12, %v1293_v35  ;;  %v706_v26 = vmul.f32 %v688_v14, %v1295_v36  ;;  %vm702_vm0 = vcmp.gt.f32.partialorder %v688_v14, 0.0 }
 0x438   :  { %v1044_v50 = vpop.f32.mrf.mxu0 }
 0x439   :  { %v698_v53 = vadd.f32 %v1044_v50, %v1285_v27  ;;  %v705_v28 = vmul.f32 %v683_v52, %v1295_v36  ;;  %v47_v27 = vld [vmem:[%s1509_s1 + $0x10] sm:$0xff]  ;;  %vm701_vm9 = vcmp.gt.f32.partialorder %v683_v52, 0.0  ;;  %v710_v61 = vsel %vm702_vm0, %v688_v14, %v706_v26 }
 0x43a   :  { %v692_v54 = vpop.f32.mrf.mxu0 }
 0x43b   :  { %vm704_vm7 = vcmp.gt.f32.partialorder %v698_v53, 0.0  ;;  %v708_v7 = vmul.f32 %v698_v53, %v1295_v36  ;;  %v693_v9 = vadd.f32 %v692_v54, %v1289_v32  ;;  %v46_v32 = vld [vmem:[%s1509_s1 + $0x8] sm:$0xff]  ;;  %v709_v63 = vsel %vm701_vm9, %v683_v52, %v705_v28 }
 0x43c   :  { %v714_v2 = vsub.f32 %v710_v61, %v46_v32 }
 0x43d   :  { %vm703_vm8 = vcmp.gt.f32.partialorder %v693_v9, 0.0  ;;  %v707_v35 = vmul.f32 %v693_v9, %v1295_v36  ;;  %v712_v56 = vsel %vm704_vm7, %v698_v53, %v708_v7  ;;  %v45_v36 = vld [vmem:[%s1509_s1] sm:$0xff] }
 0x43e   :  { %v716_v57 = vsub.f32 %v712_v56, %v48_v5  ;;  %v713_v4 = vsub.f32 %v709_v63, %v45_v36 }
 0x43f   :  { %v711_v60 = vsel %vm703_vm8, %v693_v9, %v707_v35 }
 0x440   :  { %1045 = vmatprep.subr.mxu1 %v716_v57  ;;  %v715_v62 = vsub.f32 %v711_v60, %v47_v27 }
 0x441   :  { %1046 = vmatpush3.msra.mxu1 %v716_v57 }
 0x442   :  { %1047 = vmatprep.subr.mxu1 %v715_v62 }
 0x443   :  { %1048 = vmatpush3.msra.mxu1 %v715_v62 }
 0x444   :  { %1049 = vmatprep.subr.mxu1 %v714_v2 }
 0x445   :  { %1050 = vmatpush3.msra.mxu1 %v714_v2 }
 0x446   :  { %1051 = vmatprep.subr.mxu1 %v713_v4 }
 0x447   :  { %1052 = vmatpush3.msra.mxu1 %v713_v4 }
 0x448   :  { %1054 = vmatmul.mubr.msk.f32.vlgmr.msra.gmra.mxu1 %vm194_vm1, %v1274_v25 }
 0x449   :  { %1056 = vmatprep.mubr.msk.f32.mxu1 %vm194_vm1, %v1268_v24 }
 0x44c   :  { %1057 = vmatmul.mubr.msk.f32.gmra.mxu1 %vm194_vm1, %v1262_v23 }
 0x44d   :  { %1059 = vmatprep.mubr.msk.f32.mxu1 %vm194_vm1, %v1256_v22 }
 0x450   :  { %1060 = vmatmul.mubr.msk.f32.gmra.mxu1 %vm194_vm1, %v1250_v21 }
 0x451   :  { %1062 = vmatprep.mubr.msk.f32.mxu1 %vm194_vm1, %v1244_v20 }
 0x454   :  { %1063 = vmatmul.mubr.msk.f32.gmra.mxu1 %vm194_vm1, %v1239_v19 }
 0x508   :  { %v1055_v11 = vpop.f32.mrf.mxu1 }
 0x509   :  { %v789_v25 = vadd.f32 %v1055_v11, %v1362_v29 }
 0x50a   :  { %v783_v13 = vpop.f32.mrf.mxu1 }
 0x50b   :  { %vm823_vm10 = vcmp.gt.f32.partialorder %v789_v25, 0.0  ;;  %v831_v24 = vmul.f32 %v789_v25, %v1353_v59  ;;  %v784_v23 = vadd.f32 %v783_v13, %v1369_v16 }
 0x50c   :  { %v1058_v18 = vpop.f32.mrf.mxu1 }
 0x50d   :  { %v839_v22 = vsel %vm823_vm10, %v789_v25, %v831_v24  ;;  %vm822_vm11 = vcmp.gt.f32.partialorder %v784_v23, 0.0  ;;  %v830_v21 = vmul.f32 %v784_v23, %v1353_v59  ;;  %v799_v31 = vadd.f32 %v1058_v18, %v1347_v55 }
 0x50e   :  { %v847_v20 = vadd.f32 %v839_v22, %v1402_v48  ;;  %v793_v17 = vpop.f32.mrf.mxu1 }
 0x50f   :  { %v838_v19 = vsel %vm822_vm11, %v784_v23, %v830_v21  ;;  %vm825_vm12 = vcmp.gt.f32.partialorder %v799_v31, 0.0  ;;  %v833_v29 = vmul.f32 %v799_v31, %v1353_v59  ;;  %v794_v33 = vadd.f32 %v793_v17, %v1351_v58 }
 0x510   :  { %855 = vst.msk [vmem:[%s1513_s5 + $0x8] sm:$0xff] %vm194_vm1, %v847_v20  ;;  %v846_v34 = vadd.f32 %v838_v19, %v1407_v8  ;;  %v1061_v16 = vpop.f32.mrf.mxu1 }
 0x511   :  { %v841_v15 = vsel %vm825_vm12, %v799_v31, %v833_v29  ;;  %vm824_vm13 = vcmp.gt.f32.partialorder %v794_v33, 0.0  ;;  %v832_v55 = vmul.f32 %v794_v33, %v1353_v59  ;;  %v809_v38 = vadd.f32 %v1061_v16, %v1342_v49 }
 0x512   :  { %854 = vst.msk [vmem:[%s1513_s5] sm:$0xff] %vm194_vm1, %v846_v34  ;;  %v849_v58 = vadd.f32 %v841_v15, %v1392_v3  ;;  %v803_v0 = vpop.f32.mrf.mxu1 }
 0x513   :  { %v840_v40 = vsel %vm824_vm13, %v794_v33, %v832_v55  ;;  %vm827_vm14 = vcmp.gt.f32.partialorder %v809_v38, 0.0  ;;  %v835_v41 = vmul.f32 %v809_v38, %v1353_v59  ;;  %v804_v42 = vadd.f32 %v803_v0, %v1344_v51 }
 0x514   :  { %857 = vst.msk [vmem:[%s1513_s5 + $0x18] sm:$0xff] %vm194_vm1, %v849_v58  ;;  %v848_v49 = vadd.f32 %v840_v40, %v1397_v47  ;;  %v1064_v43 = vpop.f32.mrf.mxu1 }
 0x515   :  { %v843_v45 = vsel %vm827_vm14, %v809_v38, %v835_v41  ;;  %vm826_vm15 = vcmp.gt.f32.partialorder %v804_v42, 0.0  ;;  %v834_v6 = vmul.f32 %v804_v42, %v1353_v59  ;;  %v819_v3 = vadd.f32 %v1064_v43, %v1338_v44 }
 0x516   :  { %856 = vst.msk [vmem:[%s1513_s5 + $0x10] sm:$0xff] %vm194_vm1, %v848_v49  ;;  %v851_v51 = vadd.f32 %v843_v45, %v1380_v39  ;;  %v813_v48 = vpop.f32.mrf.mxu1 }
 0x517   :  { %v842_v8 = vsel %vm826_vm15, %v804_v42, %v834_v6  ;;  %vm829_vm2 = vcmp.gt.f32.partialorder %v819_v3, 0.0  ;;  %v837_v10 = vmul.f32 %v819_v3, %v1353_v59  ;;  %v814_v47 = vadd.f32 %v813_v48, %v1340_v46 }
 0x518   :  { %859 = vst.msk [vmem:[%s1513_s5 + $0x28] sm:$0xff] %vm194_vm1, %v851_v51  ;;  %v850_v44 = vadd.f32 %v842_v8, %v1386_v1 }
 0x519   :  { %v845_v12 = vsel %vm829_vm2, %v819_v3, %v837_v10  ;;  %vm828_vm3 = vcmp.gt.f32.partialorder %v814_v47, 0.0  ;;  %v836_v14 = vmul.f32 %v814_v47, %v1353_v59 }
 0x51a   :  { %858 = vst.msk [vmem:[%s1513_s5 + $0x20] sm:$0xff] %vm194_vm1, %v850_v44  ;;  %v853_v39 = vadd.f32 %v845_v12, %v1365_v30 }
 0x51b   :  { %v844_v50 = vsel %vm828_vm3, %v814_v47, %v836_v14 }
 0x51c   :  { %861 = vst.msk [vmem:[%s1513_s5 + $0x38] sm:$0xff] %vm194_vm1, %v853_v39  ;;  %v852_v46 = vadd.f32 %v844_v50, %v1373_v37 }
 0x51e   :  { %860 = vst.msk [vmem:[%s1513_s5 + $0x30] sm:$0xff] %vm194_vm1, %v852_v46 }
 0x51f   :  { %866 = vsyncpa [#allocation3], 1 }

</bundles_post_ra>
